<compile_context>
chip_gen: v7x
topology: tpu7x:2x2x1
jax: 0.10.0
libtpu: 0.0.40
codegen_flags: <defaults>
</compile_context>

<pallas_src>
import functools
import math

import jax
import jax.numpy as jnp
import numpy as np
from jax.experimental import pallas as pl
from jax.experimental.pallas import tpu as pltpu


def _attention_kernel(x_ref, wq_ref, wk_ref, wv_ref, wproj_ref, bproj_ref,
                      o_ref, ctx_ref, *, num_heads, head_dim):
    x = x_ref[0]                                                     # (N, C) bf16

    # Full-width QKV projections: K = C contraction depth, C output lanes.
    q_all = jnp.dot(x, wq_ref[...],                                  # scale pre-folded
                    preferred_element_type=jnp.float32).astype(jnp.bfloat16)
    k_all = jnp.dot(x, wk_ref[...],
                    preferred_element_type=jnp.float32).astype(jnp.bfloat16)
    v_all = jnp.dot(x, wv_ref[...],
                    preferred_element_type=jnp.float32).astype(jnp.bfloat16)

    # Static per-head loop: only one (N, N) score tile is live at a time; all slices
    # and context stores use static lane offsets.
    for h in range(num_heads):
        sl = slice(h * head_dim, (h + 1) * head_dim)
        q_h = q_all[:, sl]                                           # (N, hd) bf16
        k_h = k_all[:, sl]
        v_h = v_all[:, sl]

        # Scores q @ k^T with the transpose folded into the MXU contraction.
        s = jax.lax.dot_general(
            q_h, k_h, dimension_numbers=(((1,), (1,)), ((), ())),
            preferred_element_type=jnp.float32)                      # (N, N) f32

        # Numerically stable softmax numerator; normalization deferred to o_h.
        s = s - jnp.max(s, axis=-1, keepdims=True)
        p = jnp.exp(s)                                               # in (0, 1]
        denom = jnp.sum(p, axis=-1, keepdims=True)                   # (N, 1) f32

        # PV matmul on unnormalized probabilities, then (N, hd) EUP-reciprocal scale.
        o_h = jnp.dot(p.astype(jnp.bfloat16), v_h,
                      preferred_element_type=jnp.float32)            # (N, hd) f32
        o_h = o_h * pl.reciprocal(denom, approx=True)

        # Stage this head's context at its static column offset (no concatenate).
        ctx_ref[:, sl] = o_h.astype(jnp.bfloat16)

    # Single output projection with full K = C contraction depth, plus bias.
    y = jnp.dot(ctx_ref[...], wproj_ref[...],
                preferred_element_type=jnp.float32)                  # (N, C) f32
    y = y + bproj_ref[...].astype(jnp.float32)
    o_ref[0] = y.astype(o_ref.dtype)


def attention_pallas(x, w_qkv, w_proj, b_proj, *, num_heads):
    """x: (B, N, C) float32.  w_qkv: (C, 3C), w_proj: (C, C), b_proj: (1, C)."""
    B, N, C = x.shape
    head_dim = C // num_heads
    scale = head_dim ** (-0.5)

    # Host-side prep (one-time layout plumbing):
    #  - split qkv weight into q/k/v (C, C) blocks; fold the softmax scale into q
    #  - cast weights + activations to bf16 for the MXU (f32 accumulation in-kernel)
    wq = (w_qkv[:, 0 * C:1 * C] * scale).astype(jnp.bfloat16)
    wk = w_qkv[:, 1 * C:2 * C].astype(jnp.bfloat16)
    wv = w_qkv[:, 2 * C:3 * C].astype(jnp.bfloat16)
    wp = w_proj.astype(jnp.bfloat16)
    x_bf16 = x.astype(jnp.bfloat16)

    kernel = functools.partial(_attention_kernel,
                               num_heads=num_heads, head_dim=head_dim)

    return pl.pallas_call(
        kernel,
        out_shape=jax.ShapeDtypeStruct((B, N, C), x.dtype),
        grid_spec=pltpu.PrefetchScalarGridSpec(
            num_scalar_prefetch=0,
            grid=(B,),
            in_specs=[
                # Per-batch activation block.
                pl.BlockSpec((1, N, C), lambda b: (b, 0, 0)),
                # Weights: constant index_map -> DMA'd once, VMEM-resident for the grid.
                pl.BlockSpec((C, C), lambda b: (0, 0)),
                pl.BlockSpec((C, C), lambda b: (0, 0)),
                pl.BlockSpec((C, C), lambda b: (0, 0)),
                pl.BlockSpec((C, C), lambda b: (0, 0)),
                pl.BlockSpec((1, C), lambda b: (0, 0)),
            ],
            out_specs=pl.BlockSpec((1, N, C), lambda b: (b, 0, 0)),
            scratch_shapes=[pltpu.VMEM((N, C), jnp.bfloat16)],   # staged context buffer
        ),
        compiler_params=pltpu.CompilerParams(
            dimension_semantics=("parallel",),
            # 48 MiB: generous on v5e/v6e (128 MiB physical) while leaving
            # double-buffer headroom on v7x (64 MiB physical).
            vmem_limit_bytes=48 * 1024 * 1024,
        ),
    )(x_bf16, wq, wk, wv, wp, b_proj)


def attention_reference(x, w_qkv, w_proj, b_proj, *, num_heads):
    """Pure-JAX f32 reference mirroring the PyTorch forward exactly."""
    B, N, C = x.shape
    hd = C // num_heads
    scale = hd ** (-0.5)
    qkv = jnp.einsum("bnc,cd->bnd", x, w_qkv)                 # (B, N, 3C)
    qkv = qkv.reshape(B, N, 3, num_heads, hd).transpose(2, 0, 3, 1, 4)
    q, k, v = qkv[0], qkv[1], qkv[2]                          # (B, H, N, hd)
    attn = jnp.einsum("bhnd,bhmd->bhnm", q, k) * scale
    attn = jax.nn.softmax(attn, axis=-1)
    out = jnp.einsum("bhnm,bhmd->bhnd", attn, v)              # (B, H, N, hd)
    out = out.transpose(0, 2, 1, 3).reshape(B, N, C)
    return jnp.einsum("bnc,cd->bnd", out, w_proj) + b_proj[0]


if __name__ == "__main__":
    B, N, C = 2, 8, 32
    num_heads = 8

    key = jax.random.PRNGKey(0)
    k_x, k_qkv, k_proj, k_bias = jax.random.split(key, 4)

    x = jax.random.normal(k_x, (B, N, C), dtype=jnp.float32)

    # Deterministic synthetic parameters (nn.Linear-like init, transposed to (in, out)).
    bound = 1.0 / math.sqrt(C)
    w_qkv = jax.random.uniform(k_qkv, (C, 3 * C), minval=-bound, maxval=bound,
                               dtype=jnp.float32)
    w_proj = jax.random.uniform(k_proj, (C, C), minval=-bound, maxval=bound,
                                dtype=jnp.float32)
    b_proj = jax.random.uniform(k_bias, (1, C), minval=-bound, maxval=bound,
                                dtype=jnp.float32)

    out = attention_pallas(x, w_qkv, w_proj, b_proj, num_heads=num_heads)
    out = jax.block_until_ready(out)

    ref = attention_reference(x, w_qkv, w_proj, b_proj, num_heads=num_heads)
    ref = jax.block_until_ready(ref)

    # bf16 MXU inputs/activations + approx reciprocal -> bf16-level tolerance.
    np.testing.assert_allclose(np.asarray(out), np.asarray(ref),
                               rtol=3e-2, atol=3e-2)
    print("KERNEL_OK")
</pallas_src>

<mosaic_0001>
module attributes {stable_mosaic.version = 11 : i64} {
  func.func @_attention_kernel(%arg0: i32, %arg1: memref<1x8x32xbf16, #tpu.memory_space<vmem>>, %arg2: memref<32x32xbf16, #tpu.memory_space<vmem>>, %arg3: memref<32x32xbf16, #tpu.memory_space<vmem>>, %arg4: memref<32x32xbf16, #tpu.memory_space<vmem>>, %arg5: memref<32x32xbf16, #tpu.memory_space<vmem>>, %arg6: memref<1x32xf32, #tpu.memory_space<vmem>>, %arg7: memref<1x8x32xf32, #tpu.memory_space<vmem>>, %arg8: memref<8x32xbf16, #tpu.memory_space<vmem>>) attributes {dimension_semantics = [#tpu.dimension_semantics<parallel>], iteration_bounds = array<i64: 2>, scalar_prefetch = 0 : i64, scratch_operands = 1 : i64, tpu.core_type = #tpu.core_type<tc>, window_params = [{transform_indices = @transform_0, window_bounds = array<i64: 1, 8, 32>}, {pipeline_mode = #tpu.pipeline_mode<synchronous>, transform_indices = @transform_1, window_bounds = array<i64: 32, 32>}, {pipeline_mode = #tpu.pipeline_mode<synchronous>, transform_indices = @transform_2, window_bounds = array<i64: 32, 32>}, {pipeline_mode = #tpu.pipeline_mode<synchronous>, transform_indices = @transform_3, window_bounds = array<i64: 32, 32>}, {pipeline_mode = #tpu.pipeline_mode<synchronous>, transform_indices = @transform_4, window_bounds = array<i64: 32, 32>}, {pipeline_mode = #tpu.pipeline_mode<synchronous>, transform_indices = @transform_5, window_bounds = array<i64: 1, 32>}, {transform_indices = @transform_6, window_bounds = array<i64: 1, 8, 32>}]} {
    %c0 = arith.constant 0 : index
    %c0_0 = arith.constant 0 : index
    %c0_1 = arith.constant 0 : index
    %0 = vector.load %arg1[%c0, %c0_0, %c0_1] : memref<1x8x32xbf16, #tpu.memory_space<vmem>>, vector<1x8x32xbf16>
    %1 = vector.shape_cast %0 : vector<1x8x32xbf16> to vector<8x32xbf16>
    %c0_2 = arith.constant 0 : index
    %c0_3 = arith.constant 0 : index
    %2 = vector.load %arg2[%c0_2, %c0_3] : memref<32x32xbf16, #tpu.memory_space<vmem>>, vector<32x32xbf16>
    %cst = arith.constant dense<0.000000e+00> : vector<8x32xf32>
    %3 = tpu.matmul %1, %2, %cst {dimension_numbers = #tpu.dot_dimension_numbers<[1], [0], [0], [1], [0, 0, 1, 1], [], []>} : vector<8x32xbf16>, vector<32x32xbf16>, vector<8x32xf32> -> vector<8x32xf32>
    %4 = arith.truncf %3 : vector<8x32xf32> to vector<8x32xbf16>
    %c0_4 = arith.constant 0 : index
    %c0_5 = arith.constant 0 : index
    %5 = vector.load %arg3[%c0_4, %c0_5] : memref<32x32xbf16, #tpu.memory_space<vmem>>, vector<32x32xbf16>
    %cst_6 = arith.constant dense<0.000000e+00> : vector<8x32xf32>
    %6 = tpu.matmul %1, %5, %cst_6 {dimension_numbers = #tpu.dot_dimension_numbers<[1], [0], [0], [1], [0, 0, 1, 1], [], []>} : vector<8x32xbf16>, vector<32x32xbf16>, vector<8x32xf32> -> vector<8x32xf32>
    %7 = arith.truncf %6 : vector<8x32xf32> to vector<8x32xbf16>
    %c0_7 = arith.constant 0 : index
    %c0_8 = arith.constant 0 : index
    %8 = vector.load %arg4[%c0_7, %c0_8] : memref<32x32xbf16, #tpu.memory_space<vmem>>, vector<32x32xbf16>
    %cst_9 = arith.constant dense<0.000000e+00> : vector<8x32xf32>
    %9 = tpu.matmul %1, %8, %cst_9 {dimension_numbers = #tpu.dot_dimension_numbers<[1], [0], [0], [1], [0, 0, 1, 1], [], []>} : vector<8x32xbf16>, vector<32x32xbf16>, vector<8x32xf32> -> vector<8x32xf32>
    %10 = arith.truncf %9 : vector<8x32xf32> to vector<8x32xbf16>
    %11 = vector.extract_strided_slice %4 {offsets = [0, 0], sizes = [8, 4], strides = [1, 1]} : vector<8x32xbf16> to vector<8x4xbf16>
    %12 = vector.extract_strided_slice %7 {offsets = [0, 0], sizes = [8, 4], strides = [1, 1]} : vector<8x32xbf16> to vector<8x4xbf16>
    %13 = vector.extract_strided_slice %10 {offsets = [0, 0], sizes = [8, 4], strides = [1, 1]} : vector<8x32xbf16> to vector<8x4xbf16>
    %cst_10 = arith.constant dense<0.000000e+00> : vector<8x8xf32>
    %14 = tpu.matmul %11, %12, %cst_10 {dimension_numbers = #tpu.dot_dimension_numbers<[1], [1], [0], [0], [0, 0, 1, 0], [], []>} : vector<8x4xbf16>, vector<8x4xbf16>, vector<8x8xf32> -> vector<8x8xf32>
    %cst_11 = arith.constant dense<0xFF800000> : vector<8xf32>
    %15 = vector.multi_reduction <maximumf>, %14, %cst_11 [1] : vector<8x8xf32> to vector<8xf32>
    %16 = vector.shape_cast %15 : vector<8xf32> to vector<8x1xf32>
    %17 = vector.broadcast %16 : vector<8x1xf32> to vector<8x8xf32>
    %18 = arith.subf %14, %17 : vector<8x8xf32>
    %19 = math.exp %18 : vector<8x8xf32>
    %cst_12 = arith.constant dense<0.000000e+00> : vector<8xf32>
    %20 = vector.multi_reduction <add>, %19, %cst_12 [1] : vector<8x8xf32> to vector<8xf32>
    %21 = vector.shape_cast %20 : vector<8xf32> to vector<8x1xf32>
    %22 = arith.truncf %19 : vector<8x8xf32> to vector<8x8xbf16>
    %cst_13 = arith.constant dense<0.000000e+00> : vector<8x4xf32>
    %23 = tpu.matmul %22, %13, %cst_13 {dimension_numbers = #tpu.dot_dimension_numbers<[1], [0], [0], [1], [0, 0, 1, 1], [], []>} : vector<8x8xbf16>, vector<8x4xbf16>, vector<8x4xf32> -> vector<8x4xf32>
    %24 = tpu.reciprocal %21 {approx = true} : vector<8x1xf32> -> vector<8x1xf32>
    %25 = vector.broadcast %24 : vector<8x1xf32> to vector<8x4xf32>
    %26 = arith.mulf %23, %25 : vector<8x4xf32>
    %27 = arith.truncf %26 : vector<8x4xf32> to vector<8x4xbf16>
    %c0_14 = arith.constant 0 : index
    %c0_15 = arith.constant 0 : index
    %28 = vector.load %arg8[%c0_14, %c0_15] : memref<8x32xbf16, #tpu.memory_space<vmem>>, vector<8x4xbf16>
    tpu.vector_store %arg8[%c0_14, %c0_15], %27 {strides = array<i32>} : memref<8x32xbf16, #tpu.memory_space<vmem>>, vector<8x4xbf16>,
    %29 = vector.extract_strided_slice %4 {offsets = [0, 4], sizes = [8, 4], strides = [1, 1]} : vector<8x32xbf16> to vector<8x4xbf16>
    %30 = vector.extract_strided_slice %7 {offsets = [0, 4], sizes = [8, 4], strides = [1, 1]} : vector<8x32xbf16> to vector<8x4xbf16>
    %31 = vector.extract_strided_slice %10 {offsets = [0, 4], sizes = [8, 4], strides = [1, 1]} : vector<8x32xbf16> to vector<8x4xbf16>
    %cst_16 = arith.constant dense<0.000000e+00> : vector<8x8xf32>
    %32 = tpu.matmul %29, %30, %cst_16 {dimension_numbers = #tpu.dot_dimension_numbers<[1], [1], [0], [0], [0, 0, 1, 0], [], []>} : vector<8x4xbf16>, vector<8x4xbf16>, vector<8x8xf32> -> vector<8x8xf32>
    %cst_17 = arith.constant dense<0xFF800000> : vector<8xf32>
    %33 = vector.multi_reduction <maximumf>, %32, %cst_17 [1] : vector<8x8xf32> to vector<8xf32>
    %34 = vector.shape_cast %33 : vector<8xf32> to vector<8x1xf32>
    %35 = vector.broadcast %34 : vector<8x1xf32> to vector<8x8xf32>
    %36 = arith.subf %32, %35 : vector<8x8xf32>
    %37 = math.exp %36 : vector<8x8xf32>
    %cst_18 = arith.constant dense<0.000000e+00> : vector<8xf32>
    %38 = vector.multi_reduction <add>, %37, %cst_18 [1] : vector<8x8xf32> to vector<8xf32>
    %39 = vector.shape_cast %38 : vector<8xf32> to vector<8x1xf32>
    %40 = arith.truncf %37 : vector<8x8xf32> to vector<8x8xbf16>
    %cst_19 = arith.constant dense<0.000000e+00> : vector<8x4xf32>
    %41 = tpu.matmul %40, %31, %cst_19 {dimension_numbers = #tpu.dot_dimension_numbers<[1], [0], [0], [1], [0, 0, 1, 1], [], []>} : vector<8x8xbf16>, vector<8x4xbf16>, vector<8x4xf32> -> vector<8x4xf32>
    %42 = tpu.reciprocal %39 {approx = true} : vector<8x1xf32> -> vector<8x1xf32>
    %43 = vector.broadcast %42 : vector<8x1xf32> to vector<8x4xf32>
    %44 = arith.mulf %41, %43 : vector<8x4xf32>
    %45 = arith.truncf %44 : vector<8x4xf32> to vector<8x4xbf16>
    %c0_20 = arith.constant 0 : index
    %c4 = arith.constant 4 : index
    %46 = vector.load %arg8[%c0_20, %c4] : memref<8x32xbf16, #tpu.memory_space<vmem>>, vector<8x4xbf16>
    tpu.vector_store %arg8[%c0_20, %c4], %45 {strides = array<i32>} : memref<8x32xbf16, #tpu.memory_space<vmem>>, vector<8x4xbf16>,
    %47 = vector.extract_strided_slice %4 {offsets = [0, 8], sizes = [8, 4], strides = [1, 1]} : vector<8x32xbf16> to vector<8x4xbf16>
    %48 = vector.extract_strided_slice %7 {offsets = [0, 8], sizes = [8, 4], strides = [1, 1]} : vector<8x32xbf16> to vector<8x4xbf16>
    %49 = vector.extract_strided_slice %10 {offsets = [0, 8], sizes = [8, 4], strides = [1, 1]} : vector<8x32xbf16> to vector<8x4xbf16>
    %cst_21 = arith.constant dense<0.000000e+00> : vector<8x8xf32>
    %50 = tpu.matmul %47, %48, %cst_21 {dimension_numbers = #tpu.dot_dimension_numbers<[1], [1], [0], [0], [0, 0, 1, 0], [], []>} : vector<8x4xbf16>, vector<8x4xbf16>, vector<8x8xf32> -> vector<8x8xf32>
    %cst_22 = arith.constant dense<0xFF800000> : vector<8xf32>
    %51 = vector.multi_reduction <maximumf>, %50, %cst_22 [1] : vector<8x8xf32> to vector<8xf32>
    %52 = vector.shape_cast %51 : vector<8xf32> to vector<8x1xf32>
    %53 = vector.broadcast %52 : vector<8x1xf32> to vector<8x8xf32>
    %54 = arith.subf %50, %53 : vector<8x8xf32>
    %55 = math.exp %54 : vector<8x8xf32>
    %cst_23 = arith.constant dense<0.000000e+00> : vector<8xf32>
    %56 = vector.multi_reduction <add>, %55, %cst_23 [1] : vector<8x8xf32> to vector<8xf32>
    %57 = vector.shape_cast %56 : vector<8xf32> to vector<8x1xf32>
    %58 = arith.truncf %55 : vector<8x8xf32> to vector<8x8xbf16>
    %cst_24 = arith.constant dense<0.000000e+00> : vector<8x4xf32>
    %59 = tpu.matmul %58, %49, %cst_24 {dimension_numbers = #tpu.dot_dimension_numbers<[1], [0], [0], [1], [0, 0, 1, 1], [], []>} : vector<8x8xbf16>, vector<8x4xbf16>, vector<8x4xf32> -> vector<8x4xf32>
    %60 = tpu.reciprocal %57 {approx = true} : vector<8x1xf32> -> vector<8x1xf32>
    %61 = vector.broadcast %60 : vector<8x1xf32> to vector<8x4xf32>
    %62 = arith.mulf %59, %61 : vector<8x4xf32>
    %63 = arith.truncf %62 : vector<8x4xf32> to vector<8x4xbf16>
    %c0_25 = arith.constant 0 : index
    %c8 = arith.constant 8 : index
    %64 = vector.load %arg8[%c0_25, %c8] : memref<8x32xbf16, #tpu.memory_space<vmem>>, vector<8x4xbf16>
    tpu.vector_store %arg8[%c0_25, %c8], %63 {strides = array<i32>} : memref<8x32xbf16, #tpu.memory_space<vmem>>, vector<8x4xbf16>,
    %65 = vector.extract_strided_slice %4 {offsets = [0, 12], sizes = [8, 4], strides = [1, 1]} : vector<8x32xbf16> to vector<8x4xbf16>
    %66 = vector.extract_strided_slice %7 {offsets = [0, 12], sizes = [8, 4], strides = [1, 1]} : vector<8x32xbf16> to vector<8x4xbf16>
    %67 = vector.extract_strided_slice %10 {offsets = [0, 12], sizes = [8, 4], strides = [1, 1]} : vector<8x32xbf16> to vector<8x4xbf16>
    %cst_26 = arith.constant dense<0.000000e+00> : vector<8x8xf32>
    %68 = tpu.matmul %65, %66, %cst_26 {dimension_numbers = #tpu.dot_dimension_numbers<[1], [1], [0], [0], [0, 0, 1, 0], [], []>} : vector<8x4xbf16>, vector<8x4xbf16>, vector<8x8xf32> -> vector<8x8xf32>
    %cst_27 = arith.constant dense<0xFF800000> : vector<8xf32>
    %69 = vector.multi_reduction <maximumf>, %68, %cst_27 [1] : vector<8x8xf32> to vector<8xf32>
    %70 = vector.shape_cast %69 : vector<8xf32> to vector<8x1xf32>
    %71 = vector.broadcast %70 : vector<8x1xf32> to vector<8x8xf32>
    %72 = arith.subf %68, %71 : vector<8x8xf32>
    %73 = math.exp %72 : vector<8x8xf32>
    %cst_28 = arith.constant dense<0.000000e+00> : vector<8xf32>
    %74 = vector.multi_reduction <add>, %73, %cst_28 [1] : vector<8x8xf32> to vector<8xf32>
    %75 = vector.shape_cast %74 : vector<8xf32> to vector<8x1xf32>
    %76 = arith.truncf %73 : vector<8x8xf32> to vector<8x8xbf16>
    %cst_29 = arith.constant dense<0.000000e+00> : vector<8x4xf32>
    %77 = tpu.matmul %76, %67, %cst_29 {dimension_numbers = #tpu.dot_dimension_numbers<[1], [0], [0], [1], [0, 0, 1, 1], [], []>} : vector<8x8xbf16>, vector<8x4xbf16>, vector<8x4xf32> -> vector<8x4xf32>
    %78 = tpu.reciprocal %75 {approx = true} : vector<8x1xf32> -> vector<8x1xf32>
    %79 = vector.broadcast %78 : vector<8x1xf32> to vector<8x4xf32>
    %80 = arith.mulf %77, %79 : vector<8x4xf32>
    %81 = arith.truncf %80 : vector<8x4xf32> to vector<8x4xbf16>
    %c0_30 = arith.constant 0 : index
    %c12 = arith.constant 12 : index
    %82 = vector.load %arg8[%c0_30, %c12] : memref<8x32xbf16, #tpu.memory_space<vmem>>, vector<8x4xbf16>
    tpu.vector_store %arg8[%c0_30, %c12], %81 {strides = array<i32>} : memref<8x32xbf16, #tpu.memory_space<vmem>>, vector<8x4xbf16>,
    %83 = vector.extract_strided_slice %4 {offsets = [0, 16], sizes = [8, 4], strides = [1, 1]} : vector<8x32xbf16> to vector<8x4xbf16>
    %84 = vector.extract_strided_slice %7 {offsets = [0, 16], sizes = [8, 4], strides = [1, 1]} : vector<8x32xbf16> to vector<8x4xbf16>
    %85 = vector.extract_strided_slice %10 {offsets = [0, 16], sizes = [8, 4], strides = [1, 1]} : vector<8x32xbf16> to vector<8x4xbf16>
    %cst_31 = arith.constant dense<0.000000e+00> : vector<8x8xf32>
    %86 = tpu.matmul %83, %84, %cst_31 {dimension_numbers = #tpu.dot_dimension_numbers<[1], [1], [0], [0], [0, 0, 1, 0], [], []>} : vector<8x4xbf16>, vector<8x4xbf16>, vector<8x8xf32> -> vector<8x8xf32>
    %cst_32 = arith.constant dense<0xFF800000> : vector<8xf32>
    %87 = vector.multi_reduction <maximumf>, %86, %cst_32 [1] : vector<8x8xf32> to vector<8xf32>
    %88 = vector.shape_cast %87 : vector<8xf32> to vector<8x1xf32>
    %89 = vector.broadcast %88 : vector<8x1xf32> to vector<8x8xf32>
    %90 = arith.subf %86, %89 : vector<8x8xf32>
    %91 = math.exp %90 : vector<8x8xf32>
    %cst_33 = arith.constant dense<0.000000e+00> : vector<8xf32>
    %92 = vector.multi_reduction <add>, %91, %cst_33 [1] : vector<8x8xf32> to vector<8xf32>
    %93 = vector.shape_cast %92 : vector<8xf32> to vector<8x1xf32>
    %94 = arith.truncf %91 : vector<8x8xf32> to vector<8x8xbf16>
    %cst_34 = arith.constant dense<0.000000e+00> : vector<8x4xf32>
    %95 = tpu.matmul %94, %85, %cst_34 {dimension_numbers = #tpu.dot_dimension_numbers<[1], [0], [0], [1], [0, 0, 1, 1], [], []>} : vector<8x8xbf16>, vector<8x4xbf16>, vector<8x4xf32> -> vector<8x4xf32>
    %96 = tpu.reciprocal %93 {approx = true} : vector<8x1xf32> -> vector<8x1xf32>
    %97 = vector.broadcast %96 : vector<8x1xf32> to vector<8x4xf32>
    %98 = arith.mulf %95, %97 : vector<8x4xf32>
    %99 = arith.truncf %98 : vector<8x4xf32> to vector<8x4xbf16>
    %c0_35 = arith.constant 0 : index
    %c16 = arith.constant 16 : index
    %100 = vector.load %arg8[%c0_35, %c16] : memref<8x32xbf16, #tpu.memory_space<vmem>>, vector<8x4xbf16>
    tpu.vector_store %arg8[%c0_35, %c16], %99 {strides = array<i32>} : memref<8x32xbf16, #tpu.memory_space<vmem>>, vector<8x4xbf16>,
    %101 = vector.extract_strided_slice %4 {offsets = [0, 20], sizes = [8, 4], strides = [1, 1]} : vector<8x32xbf16> to vector<8x4xbf16>
    %102 = vector.extract_strided_slice %7 {offsets = [0, 20], sizes = [8, 4], strides = [1, 1]} : vector<8x32xbf16> to vector<8x4xbf16>
    %103 = vector.extract_strided_slice %10 {offsets = [0, 20], sizes = [8, 4], strides = [1, 1]} : vector<8x32xbf16> to vector<8x4xbf16>
    %cst_36 = arith.constant dense<0.000000e+00> : vector<8x8xf32>
    %104 = tpu.matmul %101, %102, %cst_36 {dimension_numbers = #tpu.dot_dimension_numbers<[1], [1], [0], [0], [0, 0, 1, 0], [], []>} : vector<8x4xbf16>, vector<8x4xbf16>, vector<8x8xf32> -> vector<8x8xf32>
    %cst_37 = arith.constant dense<0xFF800000> : vector<8xf32>
    %105 = vector.multi_reduction <maximumf>, %104, %cst_37 [1] : vector<8x8xf32> to vector<8xf32>
    %106 = vector.shape_cast %105 : vector<8xf32> to vector<8x1xf32>
    %107 = vector.broadcast %106 : vector<8x1xf32> to vector<8x8xf32>
    %108 = arith.subf %104, %107 : vector<8x8xf32>
    %109 = math.exp %108 : vector<8x8xf32>
    %cst_38 = arith.constant dense<0.000000e+00> : vector<8xf32>
    %110 = vector.multi_reduction <add>, %109, %cst_38 [1] : vector<8x8xf32> to vector<8xf32>
    %111 = vector.shape_cast %110 : vector<8xf32> to vector<8x1xf32>
    %112 = arith.truncf %109 : vector<8x8xf32> to vector<8x8xbf16>
    %cst_39 = arith.constant dense<0.000000e+00> : vector<8x4xf32>
    %113 = tpu.matmul %112, %103, %cst_39 {dimension_numbers = #tpu.dot_dimension_numbers<[1], [0], [0], [1], [0, 0, 1, 1], [], []>} : vector<8x8xbf16>, vector<8x4xbf16>, vector<8x4xf32> -> vector<8x4xf32>
    %114 = tpu.reciprocal %111 {approx = true} : vector<8x1xf32> -> vector<8x1xf32>
    %115 = vector.broadcast %114 : vector<8x1xf32> to vector<8x4xf32>
    %116 = arith.mulf %113, %115 : vector<8x4xf32>
    %117 = arith.truncf %116 : vector<8x4xf32> to vector<8x4xbf16>
    %c0_40 = arith.constant 0 : index
    %c20 = arith.constant 20 : index
    %118 = vector.load %arg8[%c0_40, %c20] : memref<8x32xbf16, #tpu.memory_space<vmem>>, vector<8x4xbf16>
    tpu.vector_store %arg8[%c0_40, %c20], %117 {strides = array<i32>} : memref<8x32xbf16, #tpu.memory_space<vmem>>, vector<8x4xbf16>,
    %119 = vector.extract_strided_slice %4 {offsets = [0, 24], sizes = [8, 4], strides = [1, 1]} : vector<8x32xbf16> to vector<8x4xbf16>
    %120 = vector.extract_strided_slice %7 {offsets = [0, 24], sizes = [8, 4], strides = [1, 1]} : vector<8x32xbf16> to vector<8x4xbf16>
    %121 = vector.extract_strided_slice %10 {offsets = [0, 24], sizes = [8, 4], strides = [1, 1]} : vector<8x32xbf16> to vector<8x4xbf16>
    %cst_41 = arith.constant dense<0.000000e+00> : vector<8x8xf32>
    %122 = tpu.matmul %119, %120, %cst_41 {dimension_numbers = #tpu.dot_dimension_numbers<[1], [1], [0], [0], [0, 0, 1, 0], [], []>} : vector<8x4xbf16>, vector<8x4xbf16>, vector<8x8xf32> -> vector<8x8xf32>
    %cst_42 = arith.constant dense<0xFF800000> : vector<8xf32>
    %123 = vector.multi_reduction <maximumf>, %122, %cst_42 [1] : vector<8x8xf32> to vector<8xf32>
    %124 = vector.shape_cast %123 : vector<8xf32> to vector<8x1xf32>
    %125 = vector.broadcast %124 : vector<8x1xf32> to vector<8x8xf32>
    %126 = arith.subf %122, %125 : vector<8x8xf32>
    %127 = math.exp %126 : vector<8x8xf32>
    %cst_43 = arith.constant dense<0.000000e+00> : vector<8xf32>
    %128 = vector.multi_reduction <add>, %127, %cst_43 [1] : vector<8x8xf32> to vector<8xf32>
    %129 = vector.shape_cast %128 : vector<8xf32> to vector<8x1xf32>
    %130 = arith.truncf %127 : vector<8x8xf32> to vector<8x8xbf16>
    %cst_44 = arith.constant dense<0.000000e+00> : vector<8x4xf32>
    %131 = tpu.matmul %130, %121, %cst_44 {dimension_numbers = #tpu.dot_dimension_numbers<[1], [0], [0], [1], [0, 0, 1, 1], [], []>} : vector<8x8xbf16>, vector<8x4xbf16>, vector<8x4xf32> -> vector<8x4xf32>
    %132 = tpu.reciprocal %129 {approx = true} : vector<8x1xf32> -> vector<8x1xf32>
    %133 = vector.broadcast %132 : vector<8x1xf32> to vector<8x4xf32>
    %134 = arith.mulf %131, %133 : vector<8x4xf32>
    %135 = arith.truncf %134 : vector<8x4xf32> to vector<8x4xbf16>
    %c0_45 = arith.constant 0 : index
    %c24 = arith.constant 24 : index
    %136 = vector.load %arg8[%c0_45, %c24] : memref<8x32xbf16, #tpu.memory_space<vmem>>, vector<8x4xbf16>
    tpu.vector_store %arg8[%c0_45, %c24], %135 {strides = array<i32>} : memref<8x32xbf16, #tpu.memory_space<vmem>>, vector<8x4xbf16>,
    %137 = vector.extract_strided_slice %4 {offsets = [0, 28], sizes = [8, 4], strides = [1, 1]} : vector<8x32xbf16> to vector<8x4xbf16>
    %138 = vector.extract_strided_slice %7 {offsets = [0, 28], sizes = [8, 4], strides = [1, 1]} : vector<8x32xbf16> to vector<8x4xbf16>
    %139 = vector.extract_strided_slice %10 {offsets = [0, 28], sizes = [8, 4], strides = [1, 1]} : vector<8x32xbf16> to vector<8x4xbf16>
    %cst_46 = arith.constant dense<0.000000e+00> : vector<8x8xf32>
    %140 = tpu.matmul %137, %138, %cst_46 {dimension_numbers = #tpu.dot_dimension_numbers<[1], [1], [0], [0], [0, 0, 1, 0], [], []>} : vector<8x4xbf16>, vector<8x4xbf16>, vector<8x8xf32> -> vector<8x8xf32>
    %cst_47 = arith.constant dense<0xFF800000> : vector<8xf32>
    %141 = vector.multi_reduction <maximumf>, %140, %cst_47 [1] : vector<8x8xf32> to vector<8xf32>
    %142 = vector.shape_cast %141 : vector<8xf32> to vector<8x1xf32>
    %143 = vector.broadcast %142 : vector<8x1xf32> to vector<8x8xf32>
    %144 = arith.subf %140, %143 : vector<8x8xf32>
    %145 = math.exp %144 : vector<8x8xf32>
    %cst_48 = arith.constant dense<0.000000e+00> : vector<8xf32>
    %146 = vector.multi_reduction <add>, %145, %cst_48 [1] : vector<8x8xf32> to vector<8xf32>
    %147 = vector.shape_cast %146 : vector<8xf32> to vector<8x1xf32>
    %148 = arith.truncf %145 : vector<8x8xf32> to vector<8x8xbf16>
    %cst_49 = arith.constant dense<0.000000e+00> : vector<8x4xf32>
    %149 = tpu.matmul %148, %139, %cst_49 {dimension_numbers = #tpu.dot_dimension_numbers<[1], [0], [0], [1], [0, 0, 1, 1], [], []>} : vector<8x8xbf16>, vector<8x4xbf16>, vector<8x4xf32> -> vector<8x4xf32>
    %150 = tpu.reciprocal %147 {approx = true} : vector<8x1xf32> -> vector<8x1xf32>
    %151 = vector.broadcast %150 : vector<8x1xf32> to vector<8x4xf32>
    %152 = arith.mulf %149, %151 : vector<8x4xf32>
    %153 = arith.truncf %152 : vector<8x4xf32> to vector<8x4xbf16>
    %c0_50 = arith.constant 0 : index
    %c28 = arith.constant 28 : index
    %154 = vector.load %arg8[%c0_50, %c28] : memref<8x32xbf16, #tpu.memory_space<vmem>>, vector<8x4xbf16>
    tpu.vector_store %arg8[%c0_50, %c28], %153 {strides = array<i32>} : memref<8x32xbf16, #tpu.memory_space<vmem>>, vector<8x4xbf16>,
    %c0_51 = arith.constant 0 : index
    %c0_52 = arith.constant 0 : index
    %155 = vector.load %arg8[%c0_51, %c0_52] : memref<8x32xbf16, #tpu.memory_space<vmem>>, vector<8x32xbf16>
    %c0_53 = arith.constant 0 : index
    %c0_54 = arith.constant 0 : index
    %156 = vector.load %arg5[%c0_53, %c0_54] : memref<32x32xbf16, #tpu.memory_space<vmem>>, vector<32x32xbf16>
    %cst_55 = arith.constant dense<0.000000e+00> : vector<8x32xf32>
    %157 = tpu.matmul %155, %156, %cst_55 {dimension_numbers = #tpu.dot_dimension_numbers<[1], [0], [0], [1], [0, 0, 1, 1], [], []>} : vector<8x32xbf16>, vector<32x32xbf16>, vector<8x32xf32> -> vector<8x32xf32>
    %c0_56 = arith.constant 0 : index
    %c0_57 = arith.constant 0 : index
    %158 = vector.load %arg6[%c0_56, %c0_57] : memref<1x32xf32, #tpu.memory_space<vmem>>, vector<1x32xf32>
    %159 = vector.broadcast %158 : vector<1x32xf32> to vector<8x32xf32>
    %160 = arith.addf %157, %159 : vector<8x32xf32>
    %c0_58 = arith.constant 0 : index
    %c0_59 = arith.constant 0 : index
    %c0_60 = arith.constant 0 : index
    %161 = vector.load %arg7[%c0_58, %c0_59, %c0_60] : memref<1x8x32xf32, #tpu.memory_space<vmem>>, vector<1x8x32xf32>
    %162 = vector.shape_cast %161 : vector<1x8x32xf32> to vector<8x32xf32>
    %163 = vector.shape_cast %160 : vector<8x32xf32> to vector<1x8x32xf32>
    tpu.vector_store %arg7[%c0_58, %c0_59, %c0_60], %163 {strides = array<i32>} : memref<1x8x32xf32, #tpu.memory_space<vmem>>, vector<1x8x32xf32>,
    return
  }
  func.func @transform_0(%arg0: i32) -> (i32, i32, i32) {
    %c0_i32 = arith.constant 0 : i32
    %c0_i32_0 = arith.constant 0 : i32
    %c0_i32_1 = arith.constant 0 : i32
    return %arg0, %c0_i32, %c0_i32_0 : i32, i32, i32
  }
  func.func @transform_1(%arg0: i32) -> (i32, i32) {
    %c0_i32 = arith.constant 0 : i32
    %c0_i32_0 = arith.constant 0 : i32
    %c0_i32_1 = arith.constant 0 : i32
    return %c0_i32, %c0_i32_0 : i32, i32
  }
  func.func @transform_2(%arg0: i32) -> (i32, i32) {
    %c0_i32 = arith.constant 0 : i32
    %c0_i32_0 = arith.constant 0 : i32
    %c0_i32_1 = arith.constant 0 : i32
    return %c0_i32, %c0_i32_0 : i32, i32
  }
  func.func @transform_3(%arg0: i32) -> (i32, i32) {
    %c0_i32 = arith.constant 0 : i32
    %c0_i32_0 = arith.constant 0 : i32
    %c0_i32_1 = arith.constant 0 : i32
    return %c0_i32, %c0_i32_0 : i32, i32
  }
  func.func @transform_4(%arg0: i32) -> (i32, i32) {
    %c0_i32 = arith.constant 0 : i32
    %c0_i32_0 = arith.constant 0 : i32
    %c0_i32_1 = arith.constant 0 : i32
    return %c0_i32, %c0_i32_0 : i32, i32
  }
  func.func @transform_5(%arg0: i32) -> (i32, i32) {
    %c0_i32 = arith.constant 0 : i32
    %c0_i32_0 = arith.constant 0 : i32
    %c0_i32_1 = arith.constant 0 : i32
    return %c0_i32, %c0_i32_0 : i32, i32
  }
  func.func @transform_6(%arg0: i32) -> (i32, i32, i32) {
    %c0_i32 = arith.constant 0 : i32
    %c0_i32_0 = arith.constant 0 : i32
    %c0_i32_1 = arith.constant 0 : i32
    return %arg0, %c0_i32, %c0_i32_0 : i32, i32, i32
  }
}

</mosaic_0001>

<bundles_post_ra>
// kernel: tpu_custom_call.1
= control target key start
LH: loop header
LB: loop body
LE: loop exit
PB: predicated region body
PF: predicated region fallthrough
CT: control target
= control target key end

     0   :  { %11 = vsyncpa [#allocation4], 0  ;;  %s2764_s0 = inlined_call_operand.hbm [shape: bf16[2,8,32], index: 0, kind: input, shape index: {}]   ;;  %s2765_s1 = inlined_call_operand.hbm [shape: bf16[32,32], index: 1, kind: input, shape index: {}]   ;;  %s2766_s2 = inlined_call_operand.hbm [shape: bf16[32,32], index: 2, kind: input, shape index: {}]   ;;  %s2767_s3 = inlined_call_operand.hbm [shape: bf16[32,32], index: 3, kind: input, shape index: {}]   ;;  %s2768_s4 = inlined_call_operand.hbm [shape: bf16[32,32], index: 4, kind: input, shape index: {}]   ;;  %s2769_s5 = inlined_call_operand.vmem [shape: f32[1,32], index: 5, kind: input, shape index: {}]   ;;  %s2770_s6 = inlined_call_operand.hbm [shape: f32[2,8,32], index: 6, kind: output, shape index: {}]  }
   0x1   :  { %13 = vsyncpa [#allocation4 + $0x1], 0 }
   0x2   :  { %14 = vsyncpa [#allocation7], 0 }
   0x3   :  { %15 = vsyncpa [#allocation10], 0 }
   0x4   :  { %16 = vsyncpa [#allocation5], 0 }
   0x5   :  { %18 = vsyncpa [#allocation5 + $0x1], 0  ;;  %s2295_s21 = smov 0   ;;  %s2297_s22 = smov 0  }
   0x6   :  { %s2299_s23 = smov 0   ;;  %s2301_s24 = smov 0  }
   0x7 LB: > { %s2236_s25 = smov [#allocation6]   ;;  %s2316_s27 = sadd.s32 4294967295, %s2234_s24   ;;  %s2234_s24 = sphi %s2301_s24, %s2794_s24   ;;  %s2230_s23 = sphi %s2299_s23, %s2793_s23   ;;  %s2226_s22 = sphi %s2297_s22, %s2792_s22   ;;  %s2222_s21 = sphi %s2295_s21, %s2791_s21  }
   0x8   : > { %s198_s26 = sshll.u32 %s2236_s25, 4  ;;  %p1639_p0 = scmp.ge.s32.totalorder %s2234_s24, 1  ;;  %s2321_s26 = int_to_ptr.vmem [resolvable:$true] %s198_s26 }
   0x9   : > { %p2771_p1 = scmp.eq.s32.totalorder %s2316_s27, 0  ;;  %p186_p2 = scmp.lt.s32.totalorder %s2234_s24, 3 }
   0xa   : > { %s2237_s29 = smov [#allocation9]   ;;  %s2238_s8 = smov [#allocation8]  }
   0xb   : > { %p2323_p3 = pnand %p1639_p0, %p186_p2  ;;  %s224_s30 = sshll.u32 %s2237_s29, 4  ;;  %s2336_s30 = int_to_ptr.vmem [resolvable:$true] %s224_s30 }
   0xc   : > { %s211_s9 = sshll.u32 %s2238_s8, 4  ;;  %s2018_s12 = scalar_lea.hbm %s2765_s1, 256  ;;  %s2338_s9 = int_to_ptr.vmem [resolvable:$true] %s211_s9 }
   0xd   : > { %s2774_s28 = scalar_select %p2323_p3, 1, 0 }
   0xe   : > { %p1893_p5 = pneg %p2323_p3  ;;  %p2019_p7 = scmp.ne.s32.totalorder %s2765_s1, %s2018_s12 }
   0xf   : > { %p2025_p11 = scmp.lt.u32.totalorder %s2018_s12, %s2765_s1 }
  0x10   : > { %p2332_p6 = pnand %p1893_p5, %p2771_p1 }
  0x12   : > { %p2348_p8 = pneg %p2332_p6 }
  0x14   : > { %p2021_p9 = pnand %p2348_p8, %p2019_p7 }
  0x16   : > { %p2022_p10 = pneg %p2021_p9 }
  0x18   : > { %p2027_p12 = pnand %p2025_p11, %p2022_p10 }
  0x1a   : > { %2030 = shalt.err (!%p2027_p12)
}
  0x1b   : > { %s2031_s18 = scalar_lea.vmem %s2321_s26, 256  ;;  %p2039_p5 = scmp.lt.s32.totalorder %s2321_s26, %s2321_s26 }
  0x1c   : > { %p2032_p13 = scmp.ne.s32.totalorder %s2321_s26, %s2031_s18  ;;  %p2040_p4 = scmp.lt.s32.totalorder %s2031_s18, %s2031_s18 }
  0x1e   : > { %p2034_p0 = pnand %p2032_p13, %p2348_p8  ;;  %p2041_p7 = por %p2040_p4, %p2039_p5 }
  0x20   : > { %p2035_p2 = pneg %p2034_p0 }
  0x22   : > { %p2042_p9 = pnand %p2041_p7, %p2035_p2 }
  0x24   : > { %2045 = shalt.err (!%p2042_p9)
}
  0x25   : > { %s2239_s19 = smov 64   ;;  %s2240_s20 = smov 4  }
  0x26   : > { %1896 = dma.hbm_to_vmem [thread:$0]  (!%p2332_p6), %s2765_s1, 256, %s2321_s26, [#allocation7], %s2239_s19, %s2239_s19, %s2240_s20  }
  0x27   : > { %s2046_s11 = scalar_lea.hbm %s2767_s3, 256 }
  0x28   : > { %p2047_p4 = scmp.ne.s32.totalorder %s2767_s3, %s2046_s11  ;;  %p2053_p12 = scmp.lt.u32.totalorder %s2046_s11, %s2767_s3 }
  0x2a   : > { %p2049_p10 = pnand %p2047_p4, %p2348_p8 }
  0x2c   : > { %p2050_p11 = pneg %p2049_p10 }
  0x2e   : > { %p2055_p13 = pnand %p2053_p12, %p2050_p11 }
  0x30   : > { %2058 = shalt.err (!%p2055_p13)
}
  0x31   : > { %s2059_s26 = scalar_lea.vmem %s2336_s30, 256  ;;  %p2067_p7 = scmp.lt.s32.totalorder %s2336_s30, %s2336_s30 }
  0x32   : > { %p2060_p0 = scmp.ne.s32.totalorder %s2336_s30, %s2059_s26  ;;  %p2068_p9 = scmp.lt.s32.totalorder %s2059_s26, %s2059_s26 }
  0x34   : > { %p2062_p2 = pnand %p2060_p0, %p2348_p8  ;;  %p2069_p4 = por %p2068_p9, %p2067_p7 }
  0x36   : > { %p2063_p5 = pneg %p2062_p2 }
  0x38   : > { %p2070_p10 = pnand %p2069_p4, %p2063_p5 }
  0x3a   : > { %2073 = shalt.err (!%p2070_p10)
}
  0x3b   : > { %1902 = dma.hbm_to_vmem [thread:$0]  (!%p2332_p6), %s2767_s3, 256, %s2336_s30, [#allocation10], %s2239_s19, %s2239_s19, %s2240_s20  }
  0x3c   : > { %s2074_s8 = scalar_lea.hbm %s2766_s2, 256 }
  0x3d   : > { %p2075_p11 = scmp.ne.s32.totalorder %s2766_s2, %s2074_s8  ;;  %p2081_p0 = scmp.lt.u32.totalorder %s2074_s8, %s2766_s2 }
  0x3f   : > { %p2077_p12 = pnand %p2075_p11, %p2348_p8 }
  0x41   : > { %p2078_p13 = pneg %p2077_p12 }
  0x43   : > { %p2083_p2 = pnand %p2081_p0, %p2078_p13 }
  0x45   : > { %2086 = shalt.err (!%p2083_p2)
}
  0x46   : > { %s2087_s30 = scalar_lea.vmem %s2338_s9, 256  ;;  %p2095_p4 = scmp.lt.s32.totalorder %s2338_s9, %s2338_s9 }
  0x47   : > { %p2088_p5 = scmp.ne.s32.totalorder %s2338_s9, %s2087_s30  ;;  %p2096_p10 = scmp.lt.s32.totalorder %s2087_s30, %s2087_s30 }
  0x49   : > { %p2090_p7 = pnand %p2088_p5, %p2348_p8  ;;  %p2097_p11 = por %p2096_p10, %p2095_p4 }
  0x4b   : > { %p2091_p9 = pneg %p2090_p7 }
  0x4d   : > { %p2098_p12 = pnand %p2097_p11, %p2091_p9 }
  0x4f   : > { %2101 = shalt.err (!%p2098_p12)
}
  0x50   : > { %1899 = dma.hbm_to_vmem [thread:$0]  (!%p2332_p6), %s2766_s2, 256, %s2338_s9, [#allocation7], %s2239_s19, %s2239_s19, %s2240_s20  }
  0x51   : > { %s2241_s26 = smov [#allocation11]   ;;  %s2102_s29 = scalar_lea.hbm %s2768_s4, 256 }
  0x52   : > { %s237_s17 = sshll.u32 %s2241_s26, 4  ;;  %p2103_p13 = scmp.ne.s32.totalorder %s2768_s4, %s2102_s29  ;;  %s238_s17 = int_to_ptr.vmem [resolvable:$true] %s237_s17 }
  0x53   : > { %p2109_p5 = scmp.lt.u32.totalorder %s2102_s29, %s2768_s4 }
  0x54   : > { %p2105_p0 = pnand %p2103_p13, %p2348_p8 }
  0x56   : > { %p2106_p2 = pneg %p2105_p0 }
  0x58   : > { %p2111_p7 = pnand %p2109_p5, %p2106_p2 }
  0x5a   : > { %2114 = shalt.err (!%p2111_p7)
}
  0x5b   : > { %s2115_s9 = scalar_lea.vmem %s238_s17, 256  ;;  %p2123_p11 = scmp.lt.s32.totalorder %s238_s17, %s238_s17 }
  0x5c   : > { %p2116_p9 = scmp.ne.s32.totalorder %s238_s17, %s2115_s9  ;;  %p2124_p12 = scmp.lt.s32.totalorder %s2115_s9, %s2115_s9 }
  0x5e   : > { %p2118_p4 = pnand %p2116_p9, %p2348_p8  ;;  %p2125_p1 = por %p2124_p12, %p2123_p11 }
  0x60   : > { %p2119_p10 = pneg %p2118_p4 }
  0x62   : > { %p2126_p3 = pnand %p2125_p1, %p2119_p10 }
  0x64   : > { %2129 = shalt.err (!%p2126_p3)
}
  0x65   : > { %1905 = dma.hbm_to_vmem [thread:$0]  (!%p2332_p6), %s2768_s4, 256, %s238_s17, [#allocation10], %s2239_s19, %s2239_s19, %s2240_s20  }
  0x66   : > { %s1638_s7 = sadd.s32 4294967294, %s2234_s24   ;;  %s2447_s15 = sadd.s32 1, %s2234_s24  }
  0x67   : > { %s28_s14 = ssub.s32 %s2234_s24, %s2447_s15  ;;  %s31_s16 = sadd.s32 1, %s2230_s23 }
  0x68   : > { %p29_p1 = scmp.eq.s32.totalorder %s28_s14, 0  ;;  %p38_p3 = scmp.ne.s32.totalorder %s2230_s23, %s2226_s22 }
  0x69   : > { %p39_p8 = scmp.eq.s32.totalorder %s2234_s24, 0  ;;  %p44_p13 = scmp.ne.s32.totalorder %s2226_s22, %s2222_s21 }
  0x6a   : > { %s2458_s26 = scalar_select %p29_p1, %s2230_s23, %s31_s16  }
  0x6b   : > { %p2460_p0 = por %p39_p8, %p38_p3  ;;  %p2778_p2 = scmp.eq.s32.totalorder %s2316_s27, 0 }
  0x6c   : > { %p173_p5 = scmp.eq.s32.totalorder %s2316_s27, 1  ;;  %p179_p7 = scmp.eq.s32.totalorder %s1638_s7, 1 }
  0x6d   : > { %p2466_p6 = por %p2778_p2, %p44_p13  ;;  %p1918_p9 = scmp.lt.s32.totalorder %s2234_s24, 2 }
  0x6e   : > { %s254_s20 = sand.u32 1, %s2230_s23   ;;  %p2473_p4 = por %p173_p5, %p38_p3 }
  0x6f   : > { %p2477_p10 = por %p179_p7, %p44_p13  ;;  %s1645_s29 = sshll.u32 %s254_s20, 2 }
  0x70   : > { %s2780_s17 = scalar_select %p2473_p4, 1, 0 }
  0x71   : > { %s2781_s25 = scalar_select %p2477_p10, 1, 0 }
  0x72   : > { %s1646_s8 = sshll.u32 %s2234_s24, 6  ;;  %s258_s9 = scalar_lea.vmem [#allocation3], %s1645_s29 }
  0x73   : > { %s2485_s12 = scalar_lea.hbm %s2764_s0, %s1646_s8  ;;  %s265_s13 = sshll.u32 %s258_s9, 4  ;;  %s2487_s13 = int_to_ptr.vmem [resolvable:$true] %s265_s13 }
  0x74   : > { %p2491_p11 = pnand %p1918_p9, %p2460_p0  ;;  %s255_s7 = scalar_lea.sflag [#allocation4], %s254_s20 }
  0x75   : > { %s2130_s14 = scalar_lea.hbm %s2485_s12, 64  ;;  %s2135_s8 = scalar_lea.hbm %s2764_s0, 128 }
  0x76   : > { %p2131_p12 = scmp.ne.s32.totalorder %s2485_s12, %s2130_s14  ;;  %p2132_p1 = pneg %p2491_p11 }
  0x77   : > { %p2136_p13 = scmp.lt.u32.totalorder %s2485_s12, %s2764_s0  ;;  %p2137_p0 = scmp.lt.u32.totalorder %s2135_s8, %s2130_s14 }
  0x78   : > { %p2133_p3 = pnand %p2132_p1, %p2131_p12  ;;  %p2139_p5 = scmp.lt.u32.totalorder %s2130_s14, %s2485_s12 }
  0x79   : > { %p2138_p2 = por %p2137_p0, %p2136_p13 }
  0x7a   : > { %p2134_p8 = pneg %p2133_p3 }
  0x7b   : > { %p2140_p7 = por %p2139_p5, %p2138_p2 }
  0x7d   : > { %p2141_p9 = pnand %p2140_p7, %p2134_p8 }
  0x7f   : > { %2144 = shalt.err (!%p2141_p9)
}
  0x80   : > { %s2145_s20 = scalar_lea.vmem %s2487_s13, 64  ;;  %s2242_s11 = smov [#allocation3]  }
  0x81   : > { %p2146_p12 = scmp.ne.s32.totalorder %s2487_s13, %s2145_s20  ;;  %s2150_s9 = sshll.u32 %s2242_s11, 4  ;;  %s2151_s9 = int_to_ptr.vmem [resolvable:$false] %s2150_s9 }
  0x82   : > { %s2152_s16 = scalar_lea.vmem %s2151_s9, 128  ;;  %p2153_p4 = scmp.lt.s32.totalorder %s2487_s13, %s2151_s9 }
  0x83   : > { %p2148_p3 = pnand %p2146_p12, %p2132_p1  ;;  %p2154_p13 = scmp.lt.s32.totalorder %s2152_s16, %s2145_s20 }
  0x85   : > { %p2149_p10 = pneg %p2148_p3  ;;  %p2155_p0 = por %p2154_p13, %p2153_p4 }
  0x87   : > { %p2156_p2 = pnand %p2155_p0, %p2149_p10 }
  0x89   : > { %2159 = shalt.err (!%p2156_p2)
}
  0x8a   : > { %1909 = dma.hbm_to_vmem [thread:$0]  (!%p2491_p11), %s2485_s12, 64, %s2487_s13, %s255_s7  }
  0x8b   : > { %p2783_p8 = scmp.ne.s32.totalorder %s2774_s28, 0 }
  0x8c   : > { %s2523_s14 = sand.u32 (!%p2783_p8), 1, %s2226_s22  }
  0x8d   : > { %274 = sbr.rel (%p2783_p8) target bundleno = 1518 (0x5ee), region = 44  ;;  %s1648_s29 = sshll.u32 (!%p2783_p8), %s2523_s14, 2 }
  0x8e   : > { %s277_s8 = scalar_lea.sflag (!%p2783_p8), [#allocation4], %s2523_s14  ;;  %s280_s18 = scalar_lea.vmem (!%p2783_p8), [#allocation3], %s1648_s29 }
  0x94   : > { %2205 = dma.done.wait (%p2466_p6), %s277_s8, 64  }
  0x95   : > { %2207 = vsyncadd (%p2466_p6), %s277_s8, 4294967232  ;;  %p2784_p4 = scmp.eq.s32.totalorder %s2316_s27, 0 }
  0x97   : > { %2209 = dma.done.wait (%p2784_p4), [#allocation7], 512   ;;  %p2785_p10 = pmov %p2784_p4 }
  0x98   : > { %p2786_p11 = pmov %p2784_p4 }
  0x99   : > { %2211 = vsyncadd (%p2785_p10), [#allocation7], 4294966784 }
  0x9a   : > { %2213 = dma.done.wait (%p2786_p11), [#allocation10], 512   ;;  %p2787_p1 = pmov %p2784_p4 }
  0x9b   : > { %v2243_v0 = vmov 0.0   ;;  %vm2244_vm0 = vmmov 0   ;;  %v1978_v1 = vld [vmem:[#allocation8] sm:$0xff]   ;;  %v1979_v2 = vld [vmem:[#allocation6] sm:$0xff]   ;;  %v1980_v3 = vld [vmem:[#allocation8 + $0x8] sm:$0xff]   ;;  %vm343_vm1 = vcmask 261120  }
  0x9c   : > { %2215 = vsyncadd (%p2787_p1), [#allocation10], 4294966784  ;;  %1753 = vmatprep.subr.bf16.mxu1 %v2243_v0  ;;  %1745 = vmatprep.subr.bf16.mxu0 %v2243_v0  ;;  %v1981_v4 = vld [vmem:[#allocation6 + $0x8] sm:$0xff]   ;;  %v326_v5 = vld [vmem:[%s280_s18] sm:$0xf]  ;;  %vm502_vm2 = vcmask 31744  }
  0x9d   : > { %1757 = vmatprep.mubr.msk.bf16.mxu1 %vm2244_vm0, %v2243_v0  ;;  %1749 = vmatprep.mubr.msk.bf16.mxu0 %vm2244_vm0, %v2243_v0  ;;  %v1982_v6 = vld [vmem:[#allocation9] sm:$0xff]   ;;  %v1983_v7 = vld [vmem:[#allocation9 + $0x8] sm:$0xff]   ;;  %s2245_s28 = smov 120   ;;  %s2246_s19 = smov 124   ;;  %vm563_vm3 = vcmask 1043456   ;;  %vm549_vm4 = vcmask 64512  }
  0x9e   : > { %1754 = vmatpush3.bf16.msra.mxu1 %v1978_v1  ;;  %1746 = vmatpush3.bf16.msra.mxu0 %v1979_v2  ;;  %s2247_s12 = smov 116   ;;  %s2248_s13 = smov 112   ;;  %vm610_vm5 = vcmask 27648   ;;  %vm732_vm6 = vcmask 60448   ;;  %vm851_vm7 = vcmask 93248   ;;  %vm970_vm8 = vcmask 126048  }
  0x9f   : > { %1755 = vmatprep.subr.bf16.mxu1 %v2243_v0  ;;  %1747 = vmatprep.subr.bf16.mxu0 %v2243_v0  ;;  %s2249_s30 = smov 108   ;;  %s2250_s7 = smov 104   ;;  %vm1089_vm9 = vcmask 158848   ;;  %vm1208_vm10 = vcmask 191648   ;;  %vm1327_vm11 = vcmask 224448   ;;  %vm1446_vm12 = vcmask 257248  }
  0xa0   : > { %s2251_s10 = smov 100   ;;  %s2252_s20 = smov 4  }
  0xa1   : > { %s2253_s11 = smov 8   ;;  %s2254_s9 = smov 12  }
  0xa2   : > { %1756 = vmatpush3.bf16.msra.mxu1 %v1980_v3  ;;  %1748 = vmatpush3.bf16.msra.mxu0 %v1981_v4  ;;  %s2255_s16 = smov 16   ;;  %s2256_s29 = smov 20  }
  0xa3   : > { %1769 = vmatprep.subr.bf16.mxu1 %v2243_v0  ;;  %1761 = vmatprep.subr.bf16.mxu0 %v2243_v0  ;;  %s2257_s8 = smov 24   ;;  %s2258_s18 = smov 28  }
  0xa4   : > { %p2788_p5 = scmp.ne.s32.totalorder %s2780_s17, 0 }
  0xa5   : > { %1758 = vmatmul.mubr.msk.bf16.vlgmr.msra.gmra.mrb[0].mxu1 %vm343_vm1, %v326_v5  ;;  %1750 = vmatmul.mubr.msk.bf16.vlgmr.msra.gmra.mrb[0].mxu0 %vm343_vm1, %v326_v5 }
  0xa6   : > { %1771 = vmatprep.mubr.msk.bf16.mxu1 %vm2244_vm0, %v2243_v0  ;;  %1762 = vmatpush3.bf16.msra.mxu0 %v1982_v6 }
  0xa7   : > { %1765 = vmatprep.mubr.msk.bf16.mxu0 %vm2244_vm0, %v2243_v0  ;;  %1763 = vmatprep.subr.bf16.mxu0 %v2243_v0 }
  0xaa   : > { %1764 = vmatpush3.bf16.msra.mxu0 %v1983_v7 }
  0xab   : > { %1775 = vmatprep.subr.bf16.mxu0 %v2243_v0 }
  0xad   : > { %1766 = vmatmul.mubr.msk.bf16.vlgmr.msra.gmra.mrb[4].mxu0 %vm343_vm1, %v326_v5 }
  0xae   : > { %1777 = vmatprep.mubr.msk.bf16.mxu0 %vm2244_vm0, %v2243_v0 }
 0x178   : > { %v438_v8 = vpop.f32.mrb[0].mxu1  ;;  %v381_v11 = vpop.f32.mrb[0].mxu0 }
 0x179   : > { %v444_v9 = vpack.c.bf16 %v438_v8, %v438_v8  ;;  %v1759_v10 = vpop.f32.mrb[1].mxu1  ;;  %v1751_v13 = vpop.f32.mrb[1].mxu0  ;;  %v387_v15 = vpack.c.bf16 %v381_v11, %v381_v11 }
 0x17a   : > { %v441_v12 = vpop.f32.mrb[2].mxu1  ;;  %v384_v17 = vpop.f32.mrb[2].mxu0 }
 0x17b   : > { %736 = vrot.lane.b32.xlu1 %v444_v9, %s2245_s28  ;;  %616 = vrot.lane.b32.xlu0 %v444_v9, %s2246_s19  ;;  %v1760_v14 = vpop.f32.mrb[3].mxu1  ;;  %v507_v16 = vsel %vm502_vm2, %v444_v9, 0  ;;  %v1752_v18 = vpop.f32.mrb[3].mxu0 }
 0x17c   : > { %1770 = vmatpush3.bf16.xpose.msra.mxu1 %v507_v16 }
 0x17d   : > { %1781 = vmatprep.subr.bf16.mxu1 %v2243_v0 }
 0x17f   : > { %734 = vrot.lane.b32.xlu1 %v387_v15, %s2245_s28  ;;  %613 = vrot.lane.b32.xlu0 %v387_v15, %s2246_s19 }
 0x180   : > { %v495_v19 = vpop.f32.mrb[4].mxu0 }
 0x181   : > { %v2579_v20 = vpack.c.bf16 %v495_v19, %v495_v19  ;;  %v1767_v21 = vpop.f32.mrb[5].mxu0 }
 0x182   : > { %v498_v22 = vpop.f32.mrb[6].mxu0 }
 0x183   : > { %853 = vrot.lane.b32.xlu1 %v387_v15, %s2247_s12  ;;  %855 = vrot.lane.b32.xlu0 %v444_v9, %s2247_s12  ;;  %v1768_v23 = vpop.f32.mrb[7].mxu0  ;;  %v565_v24 = vsel %vm563_vm3, %v2579_v20, 0 }
 0x184   : > { %1772 = vmatmul.mubr.msk.bf16.vlgmr.msra.gmra.mrb[4].mxu1 %vm502_vm2, %v387_v15  ;;  %1776 = vmatpush3.bf16.msra.mxu0 %v565_v24 }
 0x185   : > { %1783 = vmatprep.mubr.msk.bf16.mxu1 %vm2244_vm0, %v2243_v0  ;;  %1787 = vmatprep.subr.bf16.mxu0 %v2243_v0 }
 0x187   : > { %972 = vrot.lane.b32.xlu1 %v387_v15, %s2248_s13  ;;  %974 = vrot.lane.b32.xlu0 %v444_v9, %s2248_s13 }
 0x18b   : > { %1091 = vrot.lane.b32.xlu1 %v387_v15, %s2249_s30  ;;  %1093 = vrot.lane.b32.xlu0 %v444_v9, %s2249_s30 }
 0x18f   : > { %1210 = vrot.lane.b32.xlu1 %v387_v15, %s2250_s7  ;;  %1212 = vrot.lane.b32.xlu0 %v444_v9, %s2250_s7 }
 0x193   : > { %1329 = vrot.lane.b32.xlu1 %v387_v15, %s2251_s10  ;;  %1331 = vrot.lane.b32.xlu0 %v444_v9, %s2251_s10 }
 0x197   : > { %675 = vrot.lane.b32.xlu0 %v2579_v20, %s2246_s19  ;;  %794 = vrot.lane.b32.xlu1 %v2579_v20, %s2245_s28  ;;  %s1653_s28 = sshll.u32 %s2523_s14, 3 }
 0x1ed   : > { %v617_v25 = vpop.permute.xlu0 %616  ;;  %v737_v27 = vpop.permute.xlu1 %736 }
 0x1ee   : > { %v622_v26 = vsel %vm502_vm2, %v617_v25, 0  ;;  %v742_v29 = vsel %vm502_vm2, %v737_v27, 0 }
 0x1ef   : > { %1782 = vmatpush3.bf16.xpose.msra.mxu1 %v622_v26 }
 0x1f0   : > { %1793 = vmatprep.subr.bf16.mxu1 %v2243_v0 }
 0x1f1   : > { %v614_v28 = vpop.permute.xlu0 %613  ;;  %v735_v31 = vpop.permute.xlu1 %734 }
 0x1f5   : > { %v856_v30 = vpop.permute.xlu0 %855  ;;  %v854_v34 = vpop.permute.xlu1 %853 }
 0x1f6   : > { %1784 = vmatmul.mubr.msk.bf16.vlgmr.msra.gmra.mrb[8].mxu1 %vm502_vm2, %v614_v28  ;;  %v861_v32 = vsel %vm502_vm2, %v856_v30, 0 }
 0x1f7   : > { %1794 = vmatpush3.bf16.xpose.msra.mxu1 %v742_v29  ;;  %1795 = vmatprep.mubr.msk.bf16.mxu1 %vm2244_vm0, %v2243_v0 }
 0x1f8   : > { %1805 = vmatprep.subr.bf16.mxu1 %v2243_v0 }
 0x1f9   : > { %v975_v33 = vpop.permute.xlu0 %974  ;;  %v973_v37 = vpop.permute.xlu1 %972 }
 0x1fa   : > { %v980_v35 = vsel %vm502_vm2, %v975_v33, 0 }
 0x1fd   : > { %v1094_v36 = vpop.permute.xlu0 %1093  ;;  %v1092_v40 = vpop.permute.xlu1 %1091 }
 0x1fe   : > { %1796 = vmatmul.mubr.msk.bf16.vlgmr.msra.gmra.mrb[12].mxu1 %vm502_vm2, %v735_v31  ;;  %v1099_v38 = vsel %vm502_vm2, %v1094_v36, 0 }
 0x1ff   : > { %1806 = vmatpush3.bf16.xpose.msra.mxu1 %v861_v32  ;;  %1807 = vmatprep.mubr.msk.bf16.mxu1 %vm2244_vm0, %v2243_v0 }
 0x200   : > { %1817 = vmatprep.subr.bf16.mxu1 %v2243_v0 }
 0x201   : > { %v1213_v39 = vpop.permute.xlu0 %1212  ;;  %v1211_v43 = vpop.permute.xlu1 %1210 }
 0x202   : > { %v1218_v41 = vsel %vm502_vm2, %v1213_v39, 0 }
 0x205   : > { %v1332_v42 = vpop.permute.xlu0 %1331  ;;  %v1330_v45 = vpop.permute.xlu1 %1329 }
 0x206   : > { %1808 = vmatmul.mubr.msk.bf16.vlgmr.msra.gmra.mrb[16].mxu1 %vm502_vm2, %v854_v34  ;;  %v1337_v44 = vsel %vm502_vm2, %v1332_v42, 0 }
 0x207   : > { %1818 = vmatpush3.bf16.xpose.msra.mxu1 %v980_v35  ;;  %1819 = vmatprep.mubr.msk.bf16.mxu1 %vm2244_vm0, %v2243_v0 }
 0x208   : > { %1829 = vmatprep.subr.bf16.mxu1 %v2243_v0 }
 0x209   : > { %v676_v3 = vpop.permute.xlu0 %675  ;;  %v795_v31 = vpop.permute.xlu1 %794 }
 0x20a   : > { %v681_v21 = vsel %vm563_vm3, %v676_v3, 0 }
 0x20e   : > { %1820 = vmatmul.mubr.msk.bf16.vlgmr.msra.gmra.mrb[20].mxu1 %vm502_vm2, %v973_v37 }
 0x20f   : > { %1830 = vmatpush3.bf16.xpose.msra.mxu1 %v1099_v38  ;;  %1831 = vmatprep.mubr.msk.bf16.mxu1 %vm2244_vm0, %v2243_v0 }
 0x210   : > { %1841 = vmatprep.subr.bf16.mxu1 %v2243_v0 }
 0x216   : > { %1832 = vmatmul.mubr.msk.bf16.vlgmr.msra.gmra.mrb[24].mxu1 %vm502_vm2, %v1092_v40 }
 0x217   : > { %1842 = vmatpush3.bf16.xpose.msra.mxu1 %v1218_v41  ;;  %1843 = vmatprep.mubr.msk.bf16.mxu1 %vm2244_vm0, %v2243_v0 }
 0x218   : > { %1853 = vmatprep.subr.bf16.mxu1 %v2243_v0 }
 0x21e   : > { %1844 = vmatmul.mubr.msk.bf16.vlgmr.msra.gmra.mrb[28].mxu1 %vm502_vm2, %v1211_v43  ;;  %v800_v43 = vsel %vm563_vm3, %v795_v31, 0 }
 0x21f   : > { %1854 = vmatpush3.bf16.xpose.msra.mxu1 %v1337_v44  ;;  %1855 = vmatprep.mubr.msk.bf16.mxu1 %vm2244_vm0, %v2243_v0 }
 0x220   : > { %1865 = vmatprep.subr.bf16.mxu1 %v2243_v0 }
 0x226   : > { %1856 = vmatmul.mubr.msk.bf16.vlgmr.msra.gmra.mrb[32].mxu1 %vm502_vm2, %v1330_v45 }
 0x227   : > { %1869 = vmatprep.mubr.msk.bf16.mxu1 %vm2244_vm0, %v2243_v0 }
 0x257   : > { %v543_v46 = vpop.f32.mrb[4].mxu1 }
 0x258   : > { %v1773_v47 = vpop.f32.mrb[5].mxu1  ;;  %v550_v48 = vsel %vm549_vm4, %v543_v46, -inf }
 0x259   : > { %v546_v49 = vpop.f32.mrb[6].mxu1  ;;  %551 = vmax.xlane.f32.xlu0 %v550_v48 }
 0x25a   : > { %v1774_v50 = vpop.f32.mrb[7].mxu1 }
 0x2c9   : > { %v658_v51 = vpop.f32.mrb[8].mxu1 }
 0x2ca   : > { %v1785_v52 = vpop.f32.mrb[9].mxu1  ;;  %v664_v53 = vsel %vm549_vm4, %v658_v51, -inf }
 0x2cb   : > { %v661_v54 = vpop.f32.mrb[10].mxu1  ;;  %665 = vmax.xlane.f32.xlu1 %v664_v53 }
 0x2cc   : > { %v1786_v55 = vpop.f32.mrb[11].mxu1 }
 0x2d1   : > { %v778_v56 = vpop.f32.mrb[12].mxu1 }
 0x2d2   : > { %v1797_v57 = vpop.f32.mrb[13].mxu1  ;;  %v784_v58 = vsel %vm549_vm4, %v778_v56, -inf }
 0x2d3   : > { %v781_v59 = vpop.f32.mrb[14].mxu1  ;;  %785 = vmax.xlane.f32.xlu0 %v784_v58 }
 0x2d4   : > { %v1798_v60 = vpop.f32.mrb[15].mxu1 }
 0x2d9   : > { %v2626_v61 = vpop.f32.mrb[16].mxu1 }
 0x2da   : > { %v1809_v62 = vpop.f32.mrb[17].mxu1  ;;  %v903_v63 = vsel %vm549_vm4, %v2626_v61, -inf }
 0x2db   : > { %v900_v1 = vpop.f32.mrb[18].mxu1  ;;  %904 = vmax.xlane.f32.xlu0 %v903_v63 }
 0x2dc   : > { %v1810_v2 = vpop.f32.mrb[19].mxu1  ;;  %913 = vrot.lane.b32.xlu1 %v2579_v20, %s2247_s12 }
 0x2e1   : > { %v2632_v4 = vpop.f32.mrb[20].mxu1 }
 0x2e2   : > { %v1821_v5 = vpop.f32.mrb[21].mxu1  ;;  %v1022_v27 = vsel %vm549_vm4, %v2632_v4, -inf }
 0x2e3   : > { %v1019_v6 = vpop.f32.mrb[22].mxu1 }
 0x2e4   : > { %v1822_v7 = vpop.f32.mrb[23].mxu1 }
 0x2e6   : > { %v552_v8 = vpop.xlane.xlu0 %551 }
 0x2e7   : > { %v553_v9 = vsub.f32 %v543_v46, %v552_v8 }
 0x2e9   : > { %v554_v10 = vmul.f32 1.442695, %v553_v9  ;;  %v2634_v11 = vpop.f32.mrb[24].mxu1 }
 0x2ea   : > { %v1833_v12 = vpop.f32.mrb[25].mxu1  ;;  %v1141_v28 = vsel %vm549_vm4, %v2634_v11, -inf }
 0x2eb   : > { %1986 = vpow2.f32 %v554_v10  ;;  %v1138_v13 = vpop.f32.mrb[26].mxu1 }
 0x2ec   : > { %v1834_v14 = vpop.f32.mrb[27].mxu1 }
 0x2f1   : > { %v2636_v15 = vpop.f32.mrb[28].mxu1  ;;  %1032 = vrot.lane.b32.xlu0 %v2579_v20, %s2248_s13  ;;  %s1691_s13 = sshll.u32 %s2316_s27, 7  ;;  %s1517_s27 = scalar_lea.sflag [#allocation5], %s2523_s14 }
 0x2f2   : > { %v1845_v16 = vpop.f32.mrb[29].mxu1  ;;  %v1260_v30 = vsel %vm549_vm4, %v2636_v15, -inf }
 0x2f3   : > { %v1257_v17 = vpop.f32.mrb[30].mxu1 }
 0x2f4   : > { %v1846_v18 = vpop.f32.mrb[31].mxu1 }
 0x2f5   : > { %v2640_v19 = vpop.eup %1986 }
 0x2f6   : > { %v559_v22 = vpack.c.bf16 %v2640_v19, %v2640_v19 }
 0x2f8   : > { %1778 = vmatmul.mubr.msk.bf16.vlgmr.msra.gmra.mrb[8].mxu0 %vm549_vm4, %v559_v22  ;;  %v556_v22 = vsel %vm549_vm4, %v2640_v19, 0.0 }
 0x2f9   : > { %v2646_v23 = vpop.f32.mrb[32].mxu1  ;;  %1788 = vmatpush3.bf16.msra.mxu0 %v681_v21  ;;  %1789 = vmatprep.mubr.msk.bf16.mxu0 %vm2244_vm0, %v2243_v0 }
 0x2fa   : > { %v1857_v24 = vpop.f32.mrb[33].mxu1  ;;  %1799 = vmatprep.subr.bf16.mxu0 %v2243_v0  ;;  %v1379_v29 = vsel %vm549_vm4, %v2646_v23, -inf }
 0x2fb   : > { %v1376_v25 = vpop.f32.mrb[34].mxu1 }
 0x2fc   : > { %v1858_v26 = vpop.f32.mrb[35].mxu1 }
 0x300   : > { %1023 = vmax.xlane.f32.xlu1 %v1022_v27 }
 0x304   : > { %1142 = vmax.xlane.f32.xlu1 %v1141_v28 }
 0x308   : > { %1380 = vmax.xlane.f32.xlu1 %v1379_v29 }
 0x310   : > { %1261 = vmax.xlane.f32.xlu0 %v1260_v30 }
 0x319   : > { %1151 = vrot.lane.b32.xlu1 %v2579_v20, %s2249_s30  ;;  %s324_s30 = scalar_lea.vmem [#allocation12], %s1653_s28 }
 0x326   : > { %1270 = vrot.lane.b32.xlu0 %v2579_v20, %s2250_s7  ;;  %s1530_s7 = sshll.u32 %s324_s30, 4  ;;  %s2721_s7 = int_to_ptr.vmem [resolvable:$true] %s1530_s7 }
 0x32a   : > { %1389 = vrot.lane.b32.xlu0 %v2579_v20, %s2251_s10 }
 0x358   : > { %v666_v32 = vpop.xlane.xlu1 %665 }
 0x359   : > { %v667_v33 = vsub.f32 %v658_v51, %v666_v32 }
 0x35b   : > { %v668_v34 = vmul.f32 1.442695, %v667_v33 }
 0x35c   : > { %v914_v45 = vpop.permute.xlu1 %913 }
 0x35d   : > { %1988 = vpow2.f32 %v668_v34  ;;  %v919_v48 = vsel %vm563_vm3, %v914_v45, 0 }
 0x360   : > { %v786_v35 = vpop.xlane.xlu0 %785 }
 0x361   : > { %v787_v36 = vsub.f32 %v778_v56, %v786_v35 }
 0x363   : > { %v788_v37 = vmul.f32 1.442695, %v787_v36 }
 0x365   : > { %1990 = vpow2.f32 %v788_v37 }
 0x367   : > { %v1989_v38 = vpop.eup %1988 }
 0x368   : > { %v905_v39 = vpop.xlane.xlu0 %904  ;;  %v670_v40 = vsel %vm549_vm4, %v1989_v38, 0.0  ;;  %v673_v41 = vpack.c.bf16 %v1989_v38, %v1989_v38 }
 0x369   : > { %v906_v42 = vsub.f32 %v2626_v61, %v905_v39  ;;  %671 = vadd.xlane.f32.xlu1 %v670_v40 }
 0x36a   : > { %1790 = vmatmul.mubr.msk.bf16.vlgmr.msra.gmra.mrb[12].mxu0 %vm549_vm4, %v673_v41 }
 0x36b   : > { %v907_v20 = vmul.f32 1.442695, %v906_v42  ;;  %1800 = vmatpush3.bf16.msra.mxu0 %v800_v43  ;;  %1801 = vmatprep.mubr.msk.bf16.mxu0 %vm2244_vm0, %v2243_v0 }
 0x36c   : > { %1811 = vmatprep.subr.bf16.mxu0 %v2243_v0  ;;  %v1033_v50 = vpop.permute.xlu0 %1032 }
 0x36d   : > { %1992 = vpow2.f32 %v907_v20  ;;  %v1038_v53 = vsel %vm563_vm3, %v1033_v50, 0 }
 0x36f   : > { %v1991_v44 = vpop.eup %1990 }
 0x370   : > { %v790_v46 = vsel %vm549_vm4, %v1991_v44, 0.0  ;;  %v793_v47 = vpack.c.bf16 %v1991_v44, %v1991_v44 }
 0x371   : > { %791 = vadd.xlane.f32.xlu0 %v790_v46 }
 0x372   : > { %1802 = vmatmul.mubr.msk.bf16.vlgmr.msra.gmra.mrb[16].mxu0 %vm549_vm4, %v793_v47 }
 0x373   : > { %1812 = vmatpush3.bf16.msra.mxu0 %v919_v48  ;;  %1813 = vmatprep.mubr.msk.bf16.mxu0 %vm2244_vm0, %v2243_v0 }
 0x374   : > { %1823 = vmatprep.subr.bf16.mxu0 %v2243_v0 }
 0x377   : > { %v1993_v49 = vpop.eup %1992 }
 0x378   : > { %v909_v51 = vsel %vm549_vm4, %v1993_v49, 0.0  ;;  %v912_v52 = vpack.c.bf16 %v1993_v49, %v1993_v49 }
 0x379   : > { %910 = vadd.xlane.f32.xlu0 %v909_v51 }
 0x37a   : > { %1814 = vmatmul.mubr.msk.bf16.vlgmr.msra.gmra.mrb[20].mxu0 %vm549_vm4, %v912_v52 }
 0x37b   : > { %1824 = vmatpush3.bf16.msra.mxu0 %v1038_v53  ;;  %1825 = vmatprep.mubr.msk.bf16.mxu0 %vm2244_vm0, %v2243_v0 }
 0x37c   : > { %1835 = vmatprep.subr.bf16.mxu0 %v2243_v0 }
 0x38d   : > { %v1024_v54 = vpop.xlane.xlu1 %1023 }
 0x38e   : > { %v1025_v55 = vsub.f32 %v2632_v4, %v1024_v54 }
 0x390   : > { %v1026_v56 = vmul.f32 1.442695, %v1025_v55 }
 0x391   : > { %v1143_v57 = vpop.xlane.xlu1 %1142 }
 0x392   : > { %1994 = vpow2.f32 %v1026_v56  ;;  %v1144_v58 = vsub.f32 %v2634_v11, %v1143_v57 }
 0x394   : > { %v1145_v59 = vmul.f32 1.442695, %v1144_v58 }
 0x395   : > { %v1381_v60 = vpop.xlane.xlu1 %1380 }
 0x396   : > { %1996 = vpow2.f32 %v1145_v59  ;;  %v1382_v61 = vsub.f32 %v2646_v23, %v1381_v60 }
 0x398   : > { %v1383_v62 = vmul.f32 1.442695, %v1382_v61 }
 0x399   : > { %v1152_v1 = vpop.permute.xlu1 %1151 }
 0x39a   : > { %1998 = vpow2.f32 %v1383_v62  ;;  %v1157_v6 = vsel %vm563_vm3, %v1152_v1, 0 }
 0x39c   : > { %v1995_v63 = vpop.eup %1994 }
 0x39d   : > { %v1262_v2 = vpop.xlane.xlu0 %1261  ;;  %v1028_v3 = vsel %vm549_vm4, %v1995_v63, 0.0  ;;  %v1031_v5 = vpack.c.bf16 %v1995_v63, %v1995_v63 }
 0x39e   : > { %v1263_v4 = vsub.f32 %v2636_v15, %v1262_v2  ;;  %1029 = vadd.xlane.f32.xlu1 %v1028_v3 }
 0x39f   : > { %1826 = vmatmul.mubr.msk.bf16.vlgmr.msra.gmra.mrb[24].mxu0 %vm549_vm4, %v1031_v5 }
 0x3a0   : > { %v1997_v7 = vpop.eup %1996  ;;  %v1264_v8 = vmul.f32 1.442695, %v1263_v4  ;;  %1836 = vmatpush3.bf16.msra.mxu0 %v1157_v6  ;;  %1837 = vmatprep.mubr.msk.bf16.mxu0 %vm2244_vm0, %v2243_v0 }
 0x3a1   : > { %v1147_v9 = vsel %vm549_vm4, %v1997_v7, 0.0  ;;  %1847 = vmatprep.subr.bf16.mxu0 %v2243_v0  ;;  %v1271_v11 = vpop.permute.xlu0 %1270  ;;  %v1150_v13 = vpack.c.bf16 %v1997_v7, %v1997_v7 }
 0x3a2   : > { %2000 = vpow2.f32 %v1264_v8  ;;  %1148 = vadd.xlane.f32.xlu0 %v1147_v9  ;;  %v1276_v14 = vsel %vm563_vm3, %v1271_v11, 0  ;;  %v1984_v11 = vld [vmem:[#allocation11] sm:$0xff]  }
 0x3a3   : > { %1866 = vmatpush3.bf16.msra.mxu1 %v1984_v11 }
 0x3a4   : > { %v1999_v10 = vpop.eup %1998  ;;  %1867 = vmatprep.subr.bf16.mxu1 %v2243_v0 }
 0x3a5   : > { %v1385_v12 = vsel %vm549_vm4, %v1999_v10, 0.0  ;;  %v1390_v16 = vpop.permute.xlu0 %1389  ;;  %v1388_v23 = vpack.c.bf16 %v1999_v10, %v1999_v10 }
 0x3a6   : > { %1386 = vadd.xlane.f32.xlu0 %v1385_v12  ;;  %v1395_v21 = vsel %vm563_vm3, %v1390_v16, 0 }
 0x3a7   : > { %1838 = vmatmul.mubr.msk.bf16.vlgmr.msra.gmra.mrb[28].mxu0 %vm549_vm4, %v1150_v13 }
 0x3a8   : > { %1848 = vmatpush3.bf16.msra.mxu0 %v1276_v14  ;;  %1849 = vmatprep.mubr.msk.bf16.mxu0 %vm2244_vm0, %v2243_v0 }
 0x3a9   : > { %1859 = vmatprep.subr.bf16.mxu0 %v2243_v0 }
 0x3ac   : > { %v2001_v15 = vpop.eup %2000 }
 0x3ad   : > { %v1266_v17 = vsel %vm549_vm4, %v2001_v15, 0.0  ;;  %v1269_v18 = vpack.c.bf16 %v2001_v15, %v2001_v15  ;;  %v1985_v15 = vld [vmem:[#allocation11 + $0x8] sm:$0xff]  }
 0x3ae   : > { %1267 = vadd.xlane.f32.xlu1 %v1266_v17  ;;  %1868 = vmatpush3.bf16.msra.mxu1 %v1985_v15 }
 0x3af   : > { %1850 = vmatmul.mubr.msk.bf16.vlgmr.msra.gmra.mrb[32].mxu0 %vm549_vm4, %v1269_v18 }
 0x3b0   : > { %1860 = vmatpush3.bf16.msra.mxu0 %v1395_v21  ;;  %1861 = vmatprep.mubr.msk.bf16.mxu0 %vm2244_vm0, %v2243_v0 }
 0x3b2   : > { %557 = vadd.xlane.f32.xlu1 %v556_v22 }
 0x3b7   : > { %1862 = vmatmul.mubr.msk.bf16.vlgmr.msra.gmra.mrb[36].mxu0 %vm549_vm4, %v1388_v23 }
 0x3cb   : > { %v601_v24 = vpop.f32.mrb[8].mxu0 }
 0x3cc   : > { %v1779_v25 = vpop.f32.mrb[9].mxu0 }
 0x3cd   : > { %v604_v26 = vpop.f32.mrb[10].mxu0 }
 0x3ce   : > { %v1780_v27 = vpop.f32.mrb[11].mxu0 }
 0x3f6   : > { %v672_v28 = vpop.xlane.xlu1 %671 }
 0x3f7   : > { %2002 = vrcp.f32 %v672_v28 }
 0x3fe   : > { %v792_v30 = vpop.xlane.xlu0 %791 }
 0x3ff   : > { %2004 = vrcp.f32 %v792_v30 }
 0x401   : > { %v2003_v32 = vpop.eup %2002 }
 0x406   : > { %v911_v37 = vpop.xlane.xlu0 %910 }
 0x409   : > { %v2005_v40 = vpop.eup %2004 }
 0x42b   : > { %v1030_v29 = vpop.xlane.xlu1 %1029 }
 0x42f   : > { %v1149_v56 = vpop.xlane.xlu0 %1148 }
 0x433   : > { %v1387_v6 = vpop.xlane.xlu0 %1386 }
 0x43b   : > { %v1268_v31 = vpop.xlane.xlu1 %1267 }
 0x43d   : > { %v717_v33 = vpop.f32.mrb[12].mxu0 }
 0x43e   : > { %v724_v34 = vmul.f32 %v2003_v32, %v717_v33  ;;  %v1791_v35 = vpop.f32.mrb[13].mxu0 }
 0x43f   : > { %v558_v36 = vpop.xlane.xlu1 %557  ;;  %v720_v19 = vpop.f32.mrb[14].mxu0 }
 0x440   : > { %v1694_v38 = vpack.c.bf16 %v724_v34, %v724_v34  ;;  %2006 = vrcp.f32 %v558_v36  ;;  %v1792_v39 = vpop.f32.mrb[15].mxu0  ;;  %v1686_v34 = vld [vmem:[%s2769_s5] ss:$0 sm:$0xff] }
 0x441   : > { %2008 = vrcp.f32 %v911_v37 }
 0x442   : > { %729 = vrot.lane.b32.xlu0 %v1694_v38, %s2252_s20  ;;  %2010 = vrcp.f32 %v1030_v29 }
 0x443   : > { %2012 = vrcp.f32 %v1149_v56 }
 0x444   : > { %2014 = vrcp.f32 %v1268_v31 }
 0x445   : > { %v836_v41 = vpop.f32.mrb[16].mxu0  ;;  %2016 = vrcp.f32 %v1387_v6 }
 0x446   : > { %v843_v42 = vmul.f32 %v2005_v40, %v836_v41  ;;  %v1803_v43 = vpop.f32.mrb[17].mxu0 }
 0x447   : > { %v839_v20 = vpop.f32.mrb[18].mxu0 }
 0x448   : > { %v1695_v44 = vpack.c.bf16 %v843_v42, %v843_v42  ;;  %v1804_v45 = vpop.f32.mrb[19].mxu0 }
 0x44a   : > { %v2007_v46 = vpop.eup %2006  ;;  %848 = vrot.lane.b32.xlu1 %v1695_v44, %s2253_s11  ;;  %s2719_s11 = scalar_lea.hbm %s2770_s6, %s1691_s13 }
 0x44b   : > { %v608_v47 = vmul.f32 %v2007_v46, %v601_v24  ;;  %v2009_v48 = vpop.eup %2008 }
 0x44c   : > { %v2011_v57 = vpop.eup %2010 }
 0x44d   : > { %v955_v49 = vpop.f32.mrb[20].mxu0  ;;  %v609_v50 = vpack.c.bf16 %v608_v47, %v608_v47  ;;  %v2013_v1 = vpop.eup %2012 }
 0x44e   : > { %v962_v51 = vmul.f32 %v2009_v48, %v955_v49  ;;  %v1815_v52 = vpop.f32.mrb[21].mxu0  ;;  %v2015_v9 = vpop.eup %2014 }
 0x44f   : > { %v958_v53 = vpop.f32.mrb[22].mxu0  ;;  %611 = vst.msk [vmem:[#allocation2] sm:$0xf] %vm610_vm5, %v609_v50  ;;  %v2017_v18 = vpop.eup %2016 }
 0x450   : > { %v1696_v54 = vpack.c.bf16 %v962_v51, %v962_v51  ;;  %v1816_v55 = vpop.f32.mrb[23].mxu0 }
 0x452   : > { %967 = vrot.lane.b32.xlu1 %v1696_v54, %s2254_s9  ;;  %s2160_s9 = scalar_lea.vmem %s2721_s7, 128 }
 0x453   : > { %p2161_p6 = scmp.ne.s32.totalorder %s2721_s7, %s2160_s9 }
 0x455   : > { %p2162_p7 = pnand %p2161_p6, %p2788_p5 }
 0x457   : > { %p2163_p9 = pneg %p2162_p7 }
 0x472   : > { %v1074_v58 = vpop.f32.mrb[24].mxu0 }
 0x473   : > { %v1081_v59 = vmul.f32 %v2011_v57, %v1074_v58  ;;  %v1827_v60 = vpop.f32.mrb[25].mxu0 }
 0x474   : > { %v1077_v61 = vpop.f32.mrb[26].mxu0 }
 0x475   : > { %v1697_v62 = vpack.c.bf16 %v1081_v59, %v1081_v59  ;;  %v1828_v63 = vpop.f32.mrb[27].mxu0 }
 0x477   : > { %1086 = vrot.lane.b32.xlu0 %v1697_v62, %s2255_s16  ;;  %s2259_s16 = smov [#allocation12]  }
 0x47a   : > { %v1193_v2 = vpop.f32.mrb[28].mxu0 }
 0x47b   : > { %v1200_v3 = vmul.f32 %v2013_v1, %v1193_v2  ;;  %v1839_v5 = vpop.f32.mrb[29].mxu0 }
 0x47c   : > { %v1196_v4 = vpop.f32.mrb[30].mxu0 }
 0x47d   : > { %v1698_v7 = vpack.c.bf16 %v1200_v3, %v1200_v3  ;;  %v1840_v8 = vpop.f32.mrb[31].mxu0 }
 0x47f   : > { %1205 = vrot.lane.b32.xlu1 %v1698_v7, %s2256_s29  ;;  %s2164_s29 = sshll.u32 %s2259_s16, 4  ;;  %s2165_s29 = int_to_ptr.vmem [resolvable:$false] %s2164_s29 }
 0x480   : > { %p2167_p12 = scmp.lt.s32.totalorder %s2721_s7, %s2165_s29 }
 0x482   : > { %v1312_v10 = vpop.f32.mrb[32].mxu0 }
 0x483   : > { %v1319_v12 = vmul.f32 %v2015_v9, %v1312_v10  ;;  %v1851_v13 = vpop.f32.mrb[33].mxu0 }
 0x484   : > { %v1315_v14 = vpop.f32.mrb[34].mxu0 }
 0x485   : > { %v1699_v16 = vpack.c.bf16 %v1319_v12, %v1319_v12  ;;  %v1852_v17 = vpop.f32.mrb[35].mxu0 }
 0x487   : > { %1324 = vrot.lane.b32.xlu0 %v1699_v16, %s2257_s8  ;;  %s2166_s8 = scalar_lea.vmem %s2165_s29, 256 }
 0x488   : > { %p2168_p3 = scmp.lt.s32.totalorder %s2166_s8, %s2160_s9 }
 0x48a   : > { %v1431_v21 = vpop.f32.mrb[36].mxu0  ;;  %p2169_p13 = por %p2168_p3, %p2167_p12 }
 0x48b   : > { %v1438_v22 = vmul.f32 %v2017_v18, %v1431_v21  ;;  %v1863_v23 = vpop.f32.mrb[37].mxu0 }
 0x48c   : > { %v1434_v24 = vpop.f32.mrb[38].mxu0  ;;  %p2170_p0 = pnand %p2169_p13, %p2163_p9 }
 0x48d   : > { %v1700_v25 = vpack.c.bf16 %v1438_v22, %v1438_v22  ;;  %v1864_v26 = vpop.f32.mrb[39].mxu0 }
 0x48f   : > { %1443 = vrot.lane.b32.xlu1 %v1700_v25, %s2258_s18 }
 0x4b4   : > { %v730_v27 = vpop.permute.xlu0 %729 }
 0x4b5   : > { %733 = vst.msk [vmem:[#allocation2] sm:$0xf] %vm732_vm6, %v730_v27 }
 0x4bc   : > { %v849_v28 = vpop.permute.xlu1 %848 }
 0x4bd   : > { %852 = vst.msk [vmem:[#allocation2] sm:$0xf] %vm851_vm7, %v849_v28 }
 0x4c4   : > { %v968_v0 = vpop.permute.xlu1 %967 }
 0x4c5   : > { %971 = vst.msk [vmem:[#allocation2] sm:$0xf] %vm970_vm8, %v968_v0 }
 0x4e9   : > { %v1087_v29 = vpop.permute.xlu0 %1086 }
 0x4ea   : > { %1090 = vst.msk [vmem:[#allocation2] sm:$0xf] %vm1089_vm9, %v1087_v29 }
 0x4f1   : > { %v1206_v30 = vpop.permute.xlu1 %1205 }
 0x4f2   : > { %1209 = vst.msk [vmem:[#allocation2] sm:$0xf] %vm1208_vm10, %v1206_v30 }
 0x4f9   : > { %v1325_v31 = vpop.permute.xlu0 %1324 }
 0x4fa   : > { %1328 = vst.msk [vmem:[#allocation2] sm:$0xf] %vm1327_vm11, %v1325_v31 }
 0x501   : > { %v1444_v32 = vpop.permute.xlu1 %1443 }
 0x502   : > { %1447 = vst.msk [vmem:[#allocation2] sm:$0xf] %vm1446_vm12, %v1444_v32 }
 0x509   : > { %v1448_v33 = vld [vmem:[#allocation2] sm:$0xf] }
 0x50a   : > { %1870 = vmatmul.mubr.msk.bf16.vlgmr.msra.gmra.mrb[36].mxu1 %vm343_vm1, %v1448_v33 }
 0x5dd   : > { %v1509_v35 = vpop.f32.mrb[36].mxu1 }
 0x5de   : > { %v1510_v36 = vadd.f32 %v1686_v34, %v1509_v35  ;;  %v1871_v19 = vpop.f32.mrb[37].mxu1 }
 0x5df   : > { %v1512_v37 = vpop.f32.mrb[38].mxu1 }
 0x5e0   : > { %v1872_v38 = vpop.f32.mrb[39].mxu1  ;;  %1515 = vst.msk [vmem:[%s324_s30] sm:$0xff] %vm343_vm1, %v1510_v36 }
 0x5e1   : > { %2173 = shalt.err (!%p2170_p0)
}
 0x5e2   : > { %s2174_s14 = scalar_lea.hbm %s2719_s11, 128  ;;  %s2178_s19 = scalar_lea.hbm %s2770_s6, 256 }
 0x5e3   : > { %p2175_p2 = scmp.ne.s32.totalorder %s2719_s11, %s2174_s14  ;;  %p2179_p10 = scmp.lt.u32.totalorder %s2719_s11, %s2770_s6 }
 0x5e4   : > { %p2180_p11 = scmp.lt.u32.totalorder %s2178_s19, %s2174_s14  ;;  %p2182_p6 = scmp.lt.u32.totalorder %s2174_s14, %s2719_s11 }
 0x5e5   : > { %p2176_p8 = pnand %p2175_p2, %p2788_p5 }
 0x5e6   : > { %p2181_p1 = por %p2180_p11, %p2179_p10 }
 0x5e7   : > { %p2177_p4 = pneg %p2176_p8 }
 0x5e8   : > { %p2183_p7 = por %p2182_p6, %p2181_p1 }
 0x5ea   : > { %p2184_p9 = pnand %p2183_p7, %p2177_p4 }
 0x5ec   : > { %2187 = shalt.err (!%p2184_p9)
}
 0x5ed   : > { %1891 = dma.vmem_to_hbm [thread:$0]  (%p2788_p5), %s2721_s7, 128, %s2719_s11, %s1517_s27  }
 0x5ee PF: > { %s1542_s30 = sand.u32 1, %s2222_s21   ;;  %p2789_p12 = scmp.ne.s32.totalorder %s2781_s25, 0 }
 0x5ef   : > { %p2790_p3 = scmp.ge.s32.totalorder %s2234_s24, 2  ;;  %s1543_s10 = scalar_lea.sflag [#allocation5], %s1542_s30 }
 0x5f1   : > { %p1911_p13 = pnand %p2790_p3, %p2789_p12 }
 0x5f3   : > { %2217 = dma.done.wait (!%p1911_p13), %s1543_s10, 128  }
 0x5f4   : > { %2219 = vsyncadd (!%p1911_p13), %s1543_s10, 4294967168  ;;  %p21_p0 = scmp.ge.s32.totalorder %s2447_s15, 4   ;;  %s2791_s21 = smov %s2226_s22 }
 0x5f5   : > { %s2792_s22 = smov %s2230_s23  ;;  %s2793_s23 = smov %s2458_s26 }
 0x5f6   : > { %s2794_s24 = smov %s2447_s15  ;;  %23 = sbr.rel (!%p21_p0) target bundleno = 7 (0x7), region = 105 }
 0x5fd   :  { %1548 = vsyncpa [#allocation4], 1 }
 0x5fe   :  { %1550 = vsyncpa [#allocation4 + $0x1], 1 }
 0x5ff   :  { %1551 = vsyncpa [#allocation7], 1 }
 0x600   :  { %1552 = vsyncpa [#allocation10], 1 }
 0x601   :  { %1553 = vsyncpa [#allocation5], 1 }
 0x602   :  { %1555 = vsyncpa [#allocation5 + $0x1], 1 }

</bundles_post_ra>
